<compile_context>
chip_gen: v7x
topology: tpu7x:2x2x1
jax: 0.10.0
libtpu: 0.0.40
codegen_flags: <defaults>
</compile_context>

<pallas_src>
import math
import functools

import numpy as np
import jax
import jax.numpy as jnp
from jax.experimental import pallas as pl
from jax.experimental.pallas import tpu as pltpu


def _make_divisible(v, divisor, min_value=None):
    if min_value is None:
        min_value = divisor
    new_v = max(min_value, int(v + divisor / 2) // divisor * divisor)
    if new_v < 0.9 * v:
        new_v += divisor
    return new_v


# tap order t = (ky+1)*3 + (kx+1), matching dw_w.reshape(C, 9)
_TAPS = tuple((ky, kx) for ky in (-1, 0, 1) for kx in (-1, 0, 1))


@functools.lru_cache(maxsize=None)
def _roll_gathers_forward():
    """True iff pltpu.roll(x, s, axis)[..., i] == x[..., (i + s) % n] on this backend."""
    def k(x_ref, o_ref):
        o_ref[...] = pltpu.roll(x_ref[...], 1, axis=1)

    x = jnp.tile(jax.lax.iota(jnp.float32, 128)[None, :], (8, 1))
    out = pl.pallas_call(
        k, out_shape=jax.ShapeDtypeStruct((8, 128), jnp.float32))(x)
    v = float(np.asarray(jax.device_get(out))[0, 0])
    if v == 1.0:
        return True
    if v == 127.0:
        return False
    raise RuntimeError(f"unexpected pltpu.roll semantics (probe value {v})")


# ---------------------------------------------------------------------------
# Fused Pallas kernel
# ---------------------------------------------------------------------------

def _ghost_bottleneck_kernel(
        x_ref,
        g1pw_w_ref, g1dw_w_ref,
        g2pw_w_ref, g2dw_w_ref,
        se_w1_ref, se_w2_ref,
        bias_ref,
        o_ref,
        h_ref,                                    # (mid_chs, L) VMEM scratch
        *, H, W, B, mid_chs, out_chs, shifts, pw_dtype):
    f32 = jnp.float32
    HW = H * W
    L = B * HW
    c1 = g1dw_w_ref.shape[0]
    c2 = g2dw_w_ref.shape[0]
    red = se_w1_ref.shape[0]

    x = x_ref[...]                                # (Cin, L), channels-first
    xf = x.astype(f32)
    b = bias_ref[...]                             # (Cpad, 6) packed biases

    # ---- hoisted lane-index boundary masks (shared by both dw convs) -------
    lane = jax.lax.broadcasted_iota(jnp.int32, (1, L), 1)
    r = lane % HW if B > 1 else lane
    w_idx = r % W
    h_idx = r // W

    def _tap_mask(ky, kx):
        conds = []
        if kx == -1:
            conds.append(w_idx >= 1)
        elif kx == 1:
            conds.append(w_idx <= W - 2)
        if ky == -1:
            conds.append(h_idx >= 1)
        elif ky == 1:
            conds.append(h_idx <= H - 2)
        if not conds:
            return None
        m = conds[0]
        for c in conds[1:]:
            m = m & c
        return m.astype(f32)

    tap_masks = tuple(_tap_mask(ky, kx) for ky, kx in _TAPS)

    def dw3x3(y, wdw):
        # y: (C, L) channels-first; wdw: (C, 9) BN-scale-folded per-tap weights
        acc = wdw[:, 4:5] * y                     # centre tap (ky = kx = 0)
        for t, (ky, kx) in enumerate(_TAPS):
            if ky == 0 and kx == 0:
                continue
            sh = y if shifts[t] == 0 else pltpu.roll(y, shifts[t], axis=1)
            acc = acc + wdw[:, t:t + 1] * (sh * tap_masks[t])
        return acc

    # ---- ghost1 (relu=True) -------------------------------------------------
    y1a = jnp.dot(g1pw_w_ref[...], x.astype(pw_dtype),
                  preferred_element_type=f32)                     # (c1, L)
    y1a = jnp.maximum(y1a + b[0:c1, 0:1], 0.0)
    y1b = jnp.maximum(dw3x3(y1a, g1dw_w_ref[...]) + b[0:c1, 1:2], 0.0)
    h_ref[0:c1, :] = y1a
    h_ref[c1:mid_chs, :] = y1b[0:mid_chs - c1, :]
    h = h_ref[...]                                                # (mid, L)

    # ---- SqueezeExcite (per-sample pooling + hard_sigmoid gate) -------------
    se_w1 = se_w1_ref[...]
    se_w2 = se_w2_ref[...]
    b1 = b[0:red, 4:5]
    b2 = b[0:mid_chs, 5:6]

    def se_gate(pooled):                          # pooled: (mid, 1)
        rr = jnp.maximum(jnp.dot(se_w1, pooled, preferred_element_type=f32)
                         + b1, 0.0)
        e = jnp.dot(se_w2, rr, preferred_element_type=f32) + b2
        return jnp.clip(e + 3.0, 0.0, 6.0) * (1.0 / 6.0)

    if B == 1:
        gate_full = se_gate(jnp.mean(h, axis=1, keepdims=True))   # (mid, 1)
    else:
        samp = lane // HW
        gate_full = jnp.zeros((mid_chs, L), f32)
        for bb in range(B):
            m = (samp == bb).astype(f32)                          # (1, L)
            pooled = jnp.sum(h * m, axis=1, keepdims=True) * (1.0 / HW)
            gate_full = gate_full + se_gate(pooled) * m
    h = h * gate_full

    # ---- ghost2 (relu=False), identity residual written straight to o_ref ---
    y2a = jnp.dot(g2pw_w_ref[...], h.astype(pw_dtype),
                  preferred_element_type=f32) + b[0:c2, 2:3]      # (c2, L)
    y2b = dw3x3(y2a, g2dw_w_ref[...]) + b[0:c2, 3:4]
    o_ref[0:c2, :] = (y2a + xf[0:c2, :]).astype(o_ref.dtype)
    o_ref[c2:out_chs, :] = (y2b[0:out_chs - c2, :]
                            + xf[c2:out_chs, :]).astype(o_ref.dtype)


# ---------------------------------------------------------------------------
# Wrapper (NCHW in / NCHW out, single fused pallas_call)
# ---------------------------------------------------------------------------

def ghost_bottleneck_v2(x_nchw, params, samples_per_block=None,
                        pw_dtype=jnp.float32):
    N, Cin, H, W = x_nchw.shape
    HW = H * W
    g1, se, g2 = params["ghost1"], params["se"], params["ghost2"]
    mid_chs, out_chs = g1["oup"], g2["oup"]
    assert Cin == out_chs, "identity shortcut requires in_chs == out_chs, stride == 1"
    c1 = g1["dw_w"].shape[0]
    c2 = g2["dw_w"].shape[0]
    red = se["w1"].shape[0]

    # --- samples per grid step: widen the lane axis but keep the grid >= 2
    if samples_per_block is None:
        target = max(1, 1024 // HW)               # aim for >= ~1024 lanes/step
        B = max(1, min(target, N // 2 if N >= 2 else 1, N))
        while N % B:
            B -= 1
    else:
        B = int(samples_per_block)
        assert N % B == 0, "samples_per_block must divide batch"
    G = N // B
    L = B * HW

    f32 = jnp.float32
    # --- fold BN scales into conv weights; only the bias adds stay in-kernel
    g1pw_w = (g1["pw_w"] * g1["pw_scale"][:, None]).astype(pw_dtype)
    g2pw_w = (g2["pw_w"] * g2["pw_scale"][:, None]).astype(pw_dtype)
    g1dw_w = (g1["dw_w"].reshape(c1, 9) * g1["dw_scale"][:, None]).astype(f32)
    g2dw_w = (g2["dw_w"].reshape(c2, 9) * g2["dw_scale"][:, None]).astype(f32)
    se_w1 = se["w1"].astype(f32)
    se_w2 = se["w2"].astype(f32)

    # --- pack all per-channel bias vectors into one array (one weight DMA)
    cpad = ((max(c1, c2, red, mid_chs) + 7) // 8) * 8
    biases = jnp.zeros((cpad, 6), f32)
    biases = biases.at[:c1, 0].set(g1["pw_bias"].astype(f32))
    biases = biases.at[:c1, 1].set(g1["dw_bias"].astype(f32))
    biases = biases.at[:c2, 2].set(g2["pw_bias"].astype(f32))
    biases = biases.at[:c2, 3].set(g2["dw_bias"].astype(f32))
    biases = biases.at[:red, 4].set(se["b1"].astype(f32))
    biases = biases.at[:mid_chs, 5].set(se["b2"].astype(f32))

    # --- static lane-roll shifts for the 9 depthwise taps
    fwd = _roll_gathers_forward()
    shifts = tuple(((ky * W + kx) % L) if fwd else ((-(ky * W + kx)) % L)
                   for ky, kx in _TAPS)

    # --- fold B samples into the lane axis: lane index p = b*HW + h*W + w
    xb = (x_nchw.reshape(G, B, Cin, HW)
                .transpose(0, 2, 1, 3)
                .reshape(G, Cin, L))

    weights = [g1pw_w, g1dw_w, g2pw_w, g2dw_w, se_w1, se_w2, biases]
    in_specs = [pl.BlockSpec((None, Cin, L), lambda n: (n, 0, 0))]
    in_specs += [pl.BlockSpec(w.shape, lambda n: (0, 0)) for w in weights]

    out = pl.pallas_call(
        functools.partial(_ghost_bottleneck_kernel, H=H, W=W, B=B,
                          mid_chs=mid_chs, out_chs=out_chs,
                          shifts=shifts, pw_dtype=pw_dtype),
        out_shape=jax.ShapeDtypeStruct((G, out_chs, L), x_nchw.dtype),
        grid=(G,),
        in_specs=in_specs,
        out_specs=pl.BlockSpec((None, out_chs, L), lambda n: (n, 0, 0)),
        scratch_shapes=[pltpu.VMEM((mid_chs, L), jnp.float32)],
        compiler_params=pltpu.CompilerParams(
            dimension_semantics=("parallel",),
            vmem_limit_bytes=32 * 1024 * 1024),
    )(xb, *weights)

    return (out.reshape(G, out_chs, B, HW)
               .transpose(0, 2, 1, 3)
               .reshape(N, out_chs, H, W))


# ---------------------------------------------------------------------------
# Deterministic params (BatchNorm folded to per-channel scale/bias)
# ---------------------------------------------------------------------------

def _fold_bn(gamma, beta, mean, var, eps=1e-5):
    scale = gamma / jnp.sqrt(var + eps)
    bias = beta - mean * scale
    return scale, bias


def _make_bn(key, c):
    k1, k2, k3, k4 = jax.random.split(key, 4)
    gamma = jax.random.uniform(k1, (c,), jnp.float32, 0.5, 1.5)
    beta = jax.random.normal(k2, (c,), jnp.float32) * 0.1
    mean = jax.random.normal(k3, (c,), jnp.float32) * 0.1
    var = jax.random.uniform(k4, (c,), jnp.float32, 0.5, 1.5)
    return _fold_bn(gamma, beta, mean, var)


def _make_ghost_params(key, inp, oup):
    init_c = math.ceil(oup / 2)          # ratio = 2, new_channels == init_c
    ks = jax.random.split(key, 4)
    pw_w = jax.random.normal(ks[0], (init_c, inp), jnp.float32) * 0.2
    pw_scale, pw_bias = _make_bn(ks[1], init_c)
    dw_w = jax.random.normal(ks[2], (init_c, 3, 3), jnp.float32) * 0.2
    dw_scale, dw_bias = _make_bn(ks[3], init_c)
    return dict(pw_w=pw_w, pw_scale=pw_scale, pw_bias=pw_bias,
                dw_w=dw_w, dw_scale=dw_scale, dw_bias=dw_bias, oup=oup)


def init_params(key, in_chs, mid_chs, out_chs, se_ratio=0.25):
    k1, k2, k3 = jax.random.split(key, 3)
    reduced = _make_divisible(mid_chs * se_ratio, 4)
    ks = jax.random.split(k2, 4)
    se = dict(
        w1=jax.random.normal(ks[0], (reduced, mid_chs), jnp.float32) * 0.2,
        b1=jax.random.normal(ks[1], (reduced,), jnp.float32) * 0.1,
        w2=jax.random.normal(ks[2], (mid_chs, reduced), jnp.float32) * 0.2,
        b2=jax.random.normal(ks[3], (mid_chs,), jnp.float32) * 0.1,
    )
    return dict(ghost1=_make_ghost_params(k1, in_chs, mid_chs),
                se=se,
                ghost2=_make_ghost_params(k3, mid_chs, out_chs))


# ---------------------------------------------------------------------------
# Pure-JAX reference (correctness check)
# ---------------------------------------------------------------------------

def reference_forward(x, params):          # x: NCHW
    def ghost(xx, p, relu):
        x1 = jnp.einsum('oc,nchw->nohw', p['pw_w'], xx)
        x1 = x1 * p['pw_scale'][None, :, None, None] + p['pw_bias'][None, :, None, None]
        if relu:
            x1 = jnp.maximum(x1, 0.0)
        C = x1.shape[1]
        w = p['dw_w'].reshape(C, 1, 3, 3)
        x2 = jax.lax.conv_general_dilated(
            x1, w, (1, 1), 'SAME',
            dimension_numbers=('NCHW', 'OIHW', 'NCHW'), feature_group_count=C)
        x2 = x2 * p['dw_scale'][None, :, None, None] + p['dw_bias'][None, :, None, None]
        if relu:
            x2 = jnp.maximum(x2, 0.0)
        return jnp.concatenate([x1, x2], axis=1)[:, :p['oup']]

    se = params['se']
    residual = x
    h = ghost(x, params['ghost1'], True)
    s = jnp.mean(h, axis=(2, 3))
    r = jnp.maximum(s @ se['w1'].T + se['b1'], 0.0)
    e = r @ se['w2'].T + se['b2']
    gate = jnp.clip(e + 3.0, 0.0, 6.0) / 6.0
    h = h * gate[:, :, None, None]
    h = ghost(h, params['ghost2'], False)
    return h + residual


# ---------------------------------------------------------------------------

if __name__ == "__main__":
    key = jax.random.PRNGKey(0)
    kx, kp = jax.random.split(key)

    N, H, W = 2, 16, 16
    in_chs, mid_chs, out_chs = 16, 32, 16          # in == out, stride == 1

    x = jax.random.normal(kx, (N, in_chs, H, W), jnp.float32)   # NCHW input
    params = init_params(kp, in_chs, mid_chs, out_chs, se_ratio=0.25)

    ref = jax.block_until_ready(reference_forward(x, params))

    # Default: 1 sample / grid step -> grid of 2 ("parallel", feeds both v7x TCs).
    out1 = jax.block_until_ready(ghost_bottleneck_v2(x, params))
    np.testing.assert_allclose(np.asarray(out1), np.asarray(ref),
                               rtol=1e-2, atol=1e-2)

    # Batched-lane path: both samples folded into one 512-lane block.
    out2 = jax.block_until_ready(
        ghost_bottleneck_v2(x, params, samples_per_block=2))
    np.testing.assert_allclose(np.asarray(out2), np.asarray(ref),
                               rtol=1e-2, atol=1e-2)

    assert out1.shape == (N, out_chs, H, W)
    print("KERNEL_OK")
</pallas_src>

<mosaic_0001>
module attributes {stable_mosaic.version = 11 : i64} {
  func.func @k(%arg0: memref<8x128xf32, #tpu.memory_space<vmem>>, %arg1: memref<8x128xf32, #tpu.memory_space<vmem>>) attributes {dimension_semantics = [], scalar_prefetch = 0 : i64, scratch_operands = 0 : i64, tpu.core_type = #tpu.core_type<tc>} {
    %c0 = arith.constant 0 : index
    %c0_0 = arith.constant 0 : index
    %0 = vector.load %arg0[%c0, %c0_0] : memref<8x128xf32, #tpu.memory_space<vmem>>, vector<8x128xf32>
    %c1_i32 = arith.constant 1 : i32
    %1 = tpu.dynamic_rotate %0 by %c1_i32 dim 1 : vector<8x128xf32>, i32 -> vector<8x128xf32>
    %c0_1 = arith.constant 0 : index
    %c0_2 = arith.constant 0 : index
    %2 = vector.load %arg1[%c0_1, %c0_2] : memref<8x128xf32, #tpu.memory_space<vmem>>, vector<8x128xf32>
    tpu.vector_store %arg1[%c0_1, %c0_2], %1 {strides = array<i32>} : memref<8x128xf32, #tpu.memory_space<vmem>>, vector<8x128xf32>,
    return
  }
}

</mosaic_0001>

<bundles_post_ra>
// kernel: tpu_custom_call.1
= control target key start
LH: loop header
LB: loop body
LE: loop exit
PB: predicated region body
PF: predicated region fallthrough
CT: control target
= control target key end

     0   :  { %6 = vsyncpa [#allocation3], 0  ;;  %s128_s0 = inlined_call_operand.hbm [shape: f32[8,128], index: 0, kind: input, shape index: {}]   ;;  %s129_s1 = inlined_call_operand.hbm [shape: f32[8,128], index: 1, kind: output, shape index: {}]  }
   0x1   :  { %7 = vsyncpa [#allocation4], 0  ;;  %s91_s6 = smov [#allocation2]   ;;  %s43_s10 = scalar_lea.hbm %s128_s0, 128 }
   0x2   :  { %s14_s7 = sshll.u32 %s91_s6, 4  ;;  %p44_p0 = scmp.ne.s32.totalorder %s128_s0, %s43_s10  ;;  %s15_s7 = int_to_ptr.vmem [resolvable:$true] %s14_s7 }
   0x3   :  { %p47_p1 = scmp.lt.u32.totalorder %s43_s10, %s128_s0 }
   0x5   :  { %p49_p2 = pnand %p47_p1, %p44_p0 }
   0x7   :  { %52 = shalt.err (!%p49_p2)
}
   0x8   :  { %s53_s15 = scalar_lea.vmem %s15_s7, 128  ;;  %p58_p4 = scmp.lt.s32.totalorder %s15_s7, %s15_s7 }
   0x9   :  { %p54_p3 = scmp.ne.s32.totalorder %s15_s7, %s53_s15  ;;  %p59_p5 = scmp.lt.s32.totalorder %s53_s15, %s53_s15 }
   0xb   :  { %p60_p6 = por %p59_p5, %p58_p4 }
   0xd   :  { %p61_p7 = pnand %p60_p6, %p54_p3 }
   0xf   :  { %64 = shalt.err (!%p61_p7)
}
  0x10   :  { %17 = dma.hbm_to_vmem [thread:$0]  %s128_s0, 128, %s15_s7, [#allocation3]  }
  0x11   :  { %87 = dma.done.wait [#allocation3], 128  }
  0x12   :  { %88 = vsyncadd [#allocation3], 4294967168  ;;  %v21_v0 = vld [vmem:[#allocation2] sm:$0xff]  ;;  %s92_s18 = smov 1   ;;  %s93_s19 = smov [#allocation5]  }
  0x13   :  { %22 = vrot.lane.b32.xlu0 %v21_v0, %s92_s18  ;;  %s31_s20 = sshll.u32 %s93_s19, 4  ;;  %s32_s20 = int_to_ptr.vmem [resolvable:$true] %s31_s20 }
  0x14   :  { %s65_s21 = scalar_lea.vmem %s32_s20, 128  ;;  %p70_p9 = scmp.lt.s32.totalorder %s32_s20, %s32_s20 }
  0x15   :  { %p66_p8 = scmp.ne.s32.totalorder %s32_s20, %s65_s21  ;;  %p71_p10 = scmp.lt.s32.totalorder %s65_s21, %s65_s21 }
  0x17   :  { %p72_p11 = por %p71_p10, %p70_p9 }
  0x19   :  { %p73_p12 = pnand %p72_p11, %p66_p8 }
  0x85   :  { %v23_v1 = vpop.permute.xlu0 %22 }
  0x86   :  { %24 = vst [vmem:[#allocation5] sm:$0xff] %v23_v1 }
  0x87   :  { %76 = shalt.err (!%p73_p12)
}
  0x88   :  { %s77_s0 = scalar_lea.hbm %s129_s1, 128 }
  0x89   :  { %p78_p13 = scmp.ne.s32.totalorder %s129_s1, %s77_s0  ;;  %p81_p0 = scmp.lt.u32.totalorder %s77_s0, %s129_s1 }
  0x8b   :  { %p83_p1 = pnand %p81_p0, %p78_p13 }
  0x8d   :  { %86 = shalt.err (!%p83_p1)
}
  0x8e   :  { %34 = dma.vmem_to_hbm [thread:$0]  %s32_s20, 128, %s129_s1, [#allocation4]  }
  0x8f   :  { %89 = dma.done.wait [#allocation4], 128  }
  0x90   :  { %90 = vsyncadd [#allocation4], 4294967168 }
  0x91   :  { %38 = vsyncpa [#allocation3], 1 }
  0x92   :  { %39 = vsyncpa [#allocation4], 1 }

</bundles_post_ra>
